<compile_context>
chip_gen: v7x
topology: tpu7x:2x2x1
jax: 0.10.0
libtpu: 0.0.40
codegen_flags: <defaults>
</compile_context>

<pallas_src>
import functools

import jax
import jax.numpy as jnp
from jax.experimental import pallas as pl
from jax.experimental.pallas import tpu as pltpu


def _fpn_kernel(x_ref,
                w1_ref, b1_ref,
                w2_ref, b2_ref,
                w3_ref, b3_ref,
                f1_ref, f2_ref, logits_ref):
    """Fused pointwise-MLP backbone forward for one tile of points.

    x tile      : (TILE_N, C_IN)   points on the sublane axis, natural layout
    f1 tile     : (TILE_N, H1)     relu(x  @ W1 + b1)   (feature map level 1)
    f2 tile     : (TILE_N, H2)     relu(f1 @ W2 + b2)   (feature map level 2)
    logits tile : (TILE_N, NCLS)   f2 @ W3 + b3         (seg logits)

    Weights arrive pre-cast to bf16 (single-pass MXU); accumulation is f32;
    each activation is cast once, stored once, and reused as the next LHS.
    """
    x = x_ref[...].astype(jnp.bfloat16)

    a1 = jnp.dot(x, w1_ref[...], preferred_element_type=jnp.float32) + b1_ref[...]
    a1 = jnp.maximum(a1, 0.0).astype(f1_ref.dtype)
    f1_ref[...] = a1

    a2 = jnp.dot(a1.astype(jnp.bfloat16), w2_ref[...],
                 preferred_element_type=jnp.float32) + b2_ref[...]
    a2 = jnp.maximum(a2, 0.0).astype(f2_ref.dtype)
    f2_ref[...] = a2

    logits = jnp.dot(a2.astype(jnp.bfloat16), w3_ref[...],
                     preferred_element_type=jnp.float32) + b3_ref[...]
    logits_ref[...] = logits.astype(logits_ref.dtype)


def _round_down_128(v):
    return max(128, (int(v) // 128) * 128)


def _pick_tile(n, tile_n):
    """Point-tile size: multiple of 128, <= tile_n, and small enough that the
    grid has >= 2 steps whenever N allows (so both v7x TensorCores get work)."""
    half = _round_down_128((n + 1) // 2)
    return max(128, min(_round_down_128(tile_n), half))


def _vmem_estimate(tile, out_itemsize):
    """Rough double-buffered working-set estimate (lane-padded to 128)."""
    lane = 128
    x_buf = tile * lane * 4                    # f32 input tile
    out_buf = 3 * tile * lane * out_itemsize   # three output tiles
    tmp = 2 * tile * lane * 4                  # f32 a1/a2 compiler temporaries
    return 2 * (x_buf + out_buf) + tmp + (2 << 20)


@functools.partial(jax.jit, static_argnames=("tile_n", "out_dtype"))
def segmentor_fpn_forward(feat, params, *, tile_n=8192, out_dtype=jnp.bfloat16):
    """Pallas-backed forward.  Returns dict(seg_logits=..., feature_maps=[...])."""
    n, c_in = feat.shape
    w1, b1 = params["w1"], params["b1"]
    w2, b2 = params["w2"], params["b2"]
    w3, b3 = params["w3"], params["b3"]
    h1, h2, ncls = w1.shape[1], w2.shape[1], w3.shape[1]

    # MXU inputs in bf16 (tiny arrays, negligible cast cost); biases stay f32
    # so the add happens on the f32 accumulator.
    w1b = w1.astype(jnp.bfloat16)
    w2b = w2.astype(jnp.bfloat16)
    w3b = w3.astype(jnp.bfloat16)
    b1f = b1.reshape(1, h1).astype(jnp.float32)
    b2f = b2.reshape(1, h2).astype(jnp.float32)
    b3f = b3.reshape(1, ncls).astype(jnp.float32)

    out_itemsize = jnp.dtype(out_dtype).itemsize

    # Generation-aware VMEM budget (v7x: 64 MiB per TC; v5e/v6e: 128 MiB).
    try:
        cap = int(pltpu.get_tpu_info().vmem_capacity_bytes)
    except Exception:
        cap = 64 << 20
    budget = (100 << 20) if cap >= (100 << 20) else (40 << 20)

    tile = _pick_tile(n, tile_n)
    while tile > 128 and _vmem_estimate(tile, out_itemsize) > budget:
        tile = _round_down_128(tile // 2)
    # Ragged tail: boundary block is clipped by Pallas, no jnp.pad of the input.
    grid = (pl.cdiv(n, tile),)

    vmem_limit = int(min(budget, max(16 << 20, _vmem_estimate(tile, out_itemsize))))

    def full_block(arr):
        # Weights / biases: single full block, broadcast to every grid step.
        return pl.BlockSpec(arr.shape, lambda i: (0, 0))

    # Advisory cost estimate (mem-bound kernel: bytes dominate).
    cost = pl.CostEstimate(
        flops=2 * n * (c_in * h1 + h1 * h2 + h2 * ncls),
        transcendentals=0,
        bytes_accessed=n * (c_in * feat.dtype.itemsize
                            + (h1 + h2 + ncls) * out_itemsize)
                       + 2 * (c_in * h1 + h1 * h2 + h2 * ncls)
                       + 4 * (h1 + h2 + ncls),
    )

    fmap1, fmap2, seg_logits = pl.pallas_call(
        _fpn_kernel,
        out_shape=(
            jax.ShapeDtypeStruct((n, h1), out_dtype),
            jax.ShapeDtypeStruct((n, h2), out_dtype),
            jax.ShapeDtypeStruct((n, ncls), out_dtype),
        ),
        grid_spec=pltpu.PrefetchScalarGridSpec(
            num_scalar_prefetch=0,
            grid=grid,
            in_specs=[
                pl.BlockSpec((tile, c_in), lambda i: (i, 0)),   # streaming x tile
                full_block(w1b), full_block(b1f),
                full_block(w2b), full_block(b2f),
                full_block(w3b), full_block(b3f),
            ],
            out_specs=(
                pl.BlockSpec((tile, h1), lambda i: (i, 0)),
                pl.BlockSpec((tile, h2), lambda i: (i, 0)),
                pl.BlockSpec((tile, ncls), lambda i: (i, 0)),
            ),
        ),
        compiler_params=pltpu.CompilerParams(
            dimension_semantics=("parallel",),   # shard point tiles across TCs
            vmem_limit_bytes=vmem_limit,
        ),
        cost_estimate=cost,
    )(feat, w1b, b1f, w2b, b2f, w3b, b3f)

    # Mirrors: return dict(seg_logits=seg_logits, feature_maps=feature_maps)
    return dict(seg_logits=seg_logits, feature_maps=[fmap1, fmap2])


def init_params(key, c_in, h1, h2, ncls):
    """Deterministic synthetic backbone parameters."""
    k1, k2, k3, k4, k5, k6 = jax.random.split(key, 6)
    return {
        "w1": jax.random.normal(k1, (c_in, h1), jnp.float32) * 0.1,
        "b1": jax.random.normal(k4, (1, h1), jnp.float32) * 0.1,
        "w2": jax.random.normal(k2, (h1, h2), jnp.float32) * 0.1,
        "b2": jax.random.normal(k5, (1, h2), jnp.float32) * 0.1,
        "w3": jax.random.normal(k3, (h2, ncls), jnp.float32) * 0.1,
        "b3": jax.random.normal(k6, (1, ncls), jnp.float32) * 0.1,
    }


def _reference_forward(feat, params):
    """Pure-JAX reference mirroring the kernel's bf16-input / f32-accumulate math."""
    bf = jnp.bfloat16
    a1 = jnp.dot(feat.astype(bf), params["w1"].astype(bf),
                 preferred_element_type=jnp.float32) + params["b1"]
    a1 = jnp.maximum(a1, 0.0).astype(bf)
    a2 = jnp.dot(a1, params["w2"].astype(bf),
                 preferred_element_type=jnp.float32) + params["b2"]
    a2 = jnp.maximum(a2, 0.0).astype(bf)
    logits = (jnp.dot(a2, params["w3"].astype(bf),
                      preferred_element_type=jnp.float32) + params["b3"]).astype(bf)
    return logits, a1, a2


if __name__ == "__main__":
    # Small shapes consistent with a pointcept-style forward: N points, C_in
    # input channels (coords + color), 2 feature-map levels, 13 classes.
    C_IN, H1, H2, NCLS = 6, 32, 64, 13

    key = jax.random.PRNGKey(0)
    k_feat, k_params = jax.random.split(key)
    params = init_params(k_params, C_IN, H1, H2, NCLS)

    for N in (256, 300):   # exact-fit and ragged (boundary-clipped) point counts
        feat = jax.random.normal(jax.random.fold_in(k_feat, N), (N, C_IN), jnp.float32)

        out = segmentor_fpn_forward(feat, params)
        jax.block_until_ready(out)

        # Correctness check against the pure-JAX reference.
        ref_logits, ref_f1, ref_f2 = _reference_forward(feat, params)
        assert out["seg_logits"].shape == (N, NCLS)
        assert out["feature_maps"][0].shape == (N, H1)
        assert out["feature_maps"][1].shape == (N, H2)

        def close(a, b):
            return bool(jnp.allclose(a.astype(jnp.float32), b.astype(jnp.float32),
                                     atol=2e-2, rtol=2e-2))

        assert close(out["feature_maps"][0], ref_f1)
        assert close(out["feature_maps"][1], ref_f2)
        assert close(out["seg_logits"], ref_logits)

    print("KERNEL_OK")
</pallas_src>

<mosaic_0001>
module attributes {stable_mosaic.version = 11 : i64} {
  func.func @_fpn_kernel(%arg0: i32, %arg1: memref<128x6xf32, #tpu.memory_space<vmem>>, %arg2: memref<6x32xbf16, #tpu.memory_space<vmem>>, %arg3: memref<1x32xf32, #tpu.memory_space<vmem>>, %arg4: memref<32x64xbf16, #tpu.memory_space<vmem>>, %arg5: memref<1x64xf32, #tpu.memory_space<vmem>>, %arg6: memref<64x13xbf16, #tpu.memory_space<vmem>>, %arg7: memref<1x13xf32, #tpu.memory_space<vmem>>, %arg8: memref<128x32xbf16, #tpu.memory_space<vmem>>, %arg9: memref<128x64xbf16, #tpu.memory_space<vmem>>, %arg10: memref<128x13xbf16, #tpu.memory_space<vmem>>) attributes {dimension_semantics = [#tpu.dimension_semantics<parallel>], iteration_bounds = array<i64: 2>, scalar_prefetch = 0 : i64, scratch_operands = 0 : i64, tpu.core_type = #tpu.core_type<tc>, window_params = [{transform_indices = @transform_0, window_bounds = array<i64: 128, 6>}, {pipeline_mode = #tpu.pipeline_mode<synchronous>, transform_indices = @transform_1, window_bounds = array<i64: 6, 32>}, {pipeline_mode = #tpu.pipeline_mode<synchronous>, transform_indices = @transform_2, window_bounds = array<i64: 1, 32>}, {pipeline_mode = #tpu.pipeline_mode<synchronous>, transform_indices = @transform_3, window_bounds = array<i64: 32, 64>}, {pipeline_mode = #tpu.pipeline_mode<synchronous>, transform_indices = @transform_4, window_bounds = array<i64: 1, 64>}, {pipeline_mode = #tpu.pipeline_mode<synchronous>, transform_indices = @transform_5, window_bounds = array<i64: 64, 13>}, {pipeline_mode = #tpu.pipeline_mode<synchronous>, transform_indices = @transform_6, window_bounds = array<i64: 1, 13>}, {transform_indices = @transform_7, window_bounds = array<i64: 128, 32>}, {transform_indices = @transform_8, window_bounds = array<i64: 128, 64>}, {transform_indices = @transform_9, window_bounds = array<i64: 128, 13>}]} {
    %c0 = arith.constant 0 : index
    %c0_0 = arith.constant 0 : index
    %0 = vector.load %arg1[%c0, %c0_0] : memref<128x6xf32, #tpu.memory_space<vmem>>, vector<128x6xf32>
    %1 = arith.truncf %0 : vector<128x6xf32> to vector<128x6xbf16>
    %c0_1 = arith.constant 0 : index
    %c0_2 = arith.constant 0 : index
    %2 = vector.load %arg2[%c0_1, %c0_2] : memref<6x32xbf16, #tpu.memory_space<vmem>>, vector<6x32xbf16>
    %cst = arith.constant dense<0.000000e+00> : vector<128x32xf32>
    %3 = tpu.matmul %1, %2, %cst {dimension_numbers = #tpu.dot_dimension_numbers<[1], [0], [0], [1], [0, 0, 1, 1], [], []>} : vector<128x6xbf16>, vector<6x32xbf16>, vector<128x32xf32> -> vector<128x32xf32>
    %c0_3 = arith.constant 0 : index
    %c0_4 = arith.constant 0 : index
    %4 = vector.load %arg3[%c0_3, %c0_4] : memref<1x32xf32, #tpu.memory_space<vmem>>, vector<1x32xf32>
    %5 = vector.broadcast %4 : vector<1x32xf32> to vector<128x32xf32>
    %6 = arith.addf %3, %5 : vector<128x32xf32>
    %cst_5 = arith.constant 0.000000e+00 : f32
    %7 = vector.broadcast %cst_5 : f32 to vector<128x32xf32>
    %8 = arith.maximumf %6, %7 : vector<128x32xf32>
    %9 = arith.truncf %8 : vector<128x32xf32> to vector<128x32xbf16>
    %c0_6 = arith.constant 0 : index
    %c0_7 = arith.constant 0 : index
    %10 = vector.load %arg8[%c0_6, %c0_7] : memref<128x32xbf16, #tpu.memory_space<vmem>>, vector<128x32xbf16>
    tpu.vector_store %arg8[%c0_6, %c0_7], %9 {strides = array<i32>} : memref<128x32xbf16, #tpu.memory_space<vmem>>, vector<128x32xbf16>,
    %c0_8 = arith.constant 0 : index
    %c0_9 = arith.constant 0 : index
    %11 = vector.load %arg4[%c0_8, %c0_9] : memref<32x64xbf16, #tpu.memory_space<vmem>>, vector<32x64xbf16>
    %cst_10 = arith.constant dense<0.000000e+00> : vector<128x64xf32>
    %12 = tpu.matmul %9, %11, %cst_10 {dimension_numbers = #tpu.dot_dimension_numbers<[1], [0], [0], [1], [0, 0, 1, 1], [], []>} : vector<128x32xbf16>, vector<32x64xbf16>, vector<128x64xf32> -> vector<128x64xf32>
    %c0_11 = arith.constant 0 : index
    %c0_12 = arith.constant 0 : index
    %13 = vector.load %arg5[%c0_11, %c0_12] : memref<1x64xf32, #tpu.memory_space<vmem>>, vector<1x64xf32>
    %14 = vector.broadcast %13 : vector<1x64xf32> to vector<128x64xf32>
    %15 = arith.addf %12, %14 : vector<128x64xf32>
    %cst_13 = arith.constant 0.000000e+00 : f32
    %16 = vector.broadcast %cst_13 : f32 to vector<128x64xf32>
    %17 = arith.maximumf %15, %16 : vector<128x64xf32>
    %18 = arith.truncf %17 : vector<128x64xf32> to vector<128x64xbf16>
    %c0_14 = arith.constant 0 : index
    %c0_15 = arith.constant 0 : index
    %19 = vector.load %arg9[%c0_14, %c0_15] : memref<128x64xbf16, #tpu.memory_space<vmem>>, vector<128x64xbf16>
    tpu.vector_store %arg9[%c0_14, %c0_15], %18 {strides = array<i32>} : memref<128x64xbf16, #tpu.memory_space<vmem>>, vector<128x64xbf16>,
    %c0_16 = arith.constant 0 : index
    %c0_17 = arith.constant 0 : index
    %20 = vector.load %arg6[%c0_16, %c0_17] : memref<64x13xbf16, #tpu.memory_space<vmem>>, vector<64x13xbf16>
    %cst_18 = arith.constant dense<0.000000e+00> : vector<128x13xf32>
    %21 = tpu.matmul %18, %20, %cst_18 {dimension_numbers = #tpu.dot_dimension_numbers<[1], [0], [0], [1], [0, 0, 1, 1], [], []>} : vector<128x64xbf16>, vector<64x13xbf16>, vector<128x13xf32> -> vector<128x13xf32>
    %c0_19 = arith.constant 0 : index
    %c0_20 = arith.constant 0 : index
    %22 = vector.load %arg7[%c0_19, %c0_20] : memref<1x13xf32, #tpu.memory_space<vmem>>, vector<1x13xf32>
    %23 = vector.broadcast %22 : vector<1x13xf32> to vector<128x13xf32>
    %24 = arith.addf %21, %23 : vector<128x13xf32>
    %25 = arith.truncf %24 : vector<128x13xf32> to vector<128x13xbf16>
    %c0_21 = arith.constant 0 : index
    %c0_22 = arith.constant 0 : index
    %26 = vector.load %arg10[%c0_21, %c0_22] : memref<128x13xbf16, #tpu.memory_space<vmem>>, vector<128x13xbf16>
    tpu.vector_store %arg10[%c0_21, %c0_22], %25 {strides = array<i32>} : memref<128x13xbf16, #tpu.memory_space<vmem>>, vector<128x13xbf16>,
    return
  }
  func.func @transform_0(%arg0: i32) -> (i32, i32) {
    %c0_i32 = arith.constant 0 : i32
    %c0_i32_0 = arith.constant 0 : i32
    return %arg0, %c0_i32 : i32, i32
  }
  func.func @transform_1(%arg0: i32) -> (i32, i32) {
    %c0_i32 = arith.constant 0 : i32
    %c0_i32_0 = arith.constant 0 : i32
    %c0_i32_1 = arith.constant 0 : i32
    return %c0_i32, %c0_i32_0 : i32, i32
  }
  func.func @transform_2(%arg0: i32) -> (i32, i32) {
    %c0_i32 = arith.constant 0 : i32
    %c0_i32_0 = arith.constant 0 : i32
    %c0_i32_1 = arith.constant 0 : i32
    return %c0_i32, %c0_i32_0 : i32, i32
  }
  func.func @transform_3(%arg0: i32) -> (i32, i32) {
    %c0_i32 = arith.constant 0 : i32
    %c0_i32_0 = arith.constant 0 : i32
    %c0_i32_1 = arith.constant 0 : i32
    return %c0_i32, %c0_i32_0 : i32, i32
  }
  func.func @transform_4(%arg0: i32) -> (i32, i32) {
    %c0_i32 = arith.constant 0 : i32
    %c0_i32_0 = arith.constant 0 : i32
    %c0_i32_1 = arith.constant 0 : i32
    return %c0_i32, %c0_i32_0 : i32, i32
  }
  func.func @transform_5(%arg0: i32) -> (i32, i32) {
    %c0_i32 = arith.constant 0 : i32
    %c0_i32_0 = arith.constant 0 : i32
    %c0_i32_1 = arith.constant 0 : i32
    return %c0_i32, %c0_i32_0 : i32, i32
  }
  func.func @transform_6(%arg0: i32) -> (i32, i32) {
    %c0_i32 = arith.constant 0 : i32
    %c0_i32_0 = arith.constant 0 : i32
    %c0_i32_1 = arith.constant 0 : i32
    return %c0_i32, %c0_i32_0 : i32, i32
  }
  func.func @transform_7(%arg0: i32) -> (i32, i32) {
    %c0_i32 = arith.constant 0 : i32
    %c0_i32_0 = arith.constant 0 : i32
    return %arg0, %c0_i32 : i32, i32
  }
  func.func @transform_8(%arg0: i32) -> (i32, i32) {
    %c0_i32 = arith.constant 0 : i32
    %c0_i32_0 = arith.constant 0 : i32
    return %arg0, %c0_i32 : i32, i32
  }
  func.func @transform_9(%arg0: i32) -> (i32, i32) {
    %c0_i32 = arith.constant 0 : i32
    %c0_i32_0 = arith.constant 0 : i32
    return %arg0, %c0_i32 : i32, i32
  }
}

</mosaic_0001>

<bundles_post_ra>
// kernel: segmentor_fpn_forward.1
= control target key start
LH: loop header
LB: loop body
LE: loop exit
PB: predicated region body
PF: predicated region fallthrough
CT: control target
= control target key end

     0   :  { %s1540_s30 = smov 0   ;;  %s1774_s0 = inlined_call_operand.vmem [shape: f32[256,6], index: 0, kind: input, shape index: {}]   ;;  %s1775_s1 = inlined_call_operand.vmem [shape: bf16[6,32], index: 1, kind: input, shape index: {}]   ;;  %s1776_s2 = inlined_call_operand.vmem [shape: f32[1,32], index: 2, kind: input, shape index: {}]   ;;  %s1777_s3 = inlined_call_operand.vmem [shape: bf16[32,64], index: 3, kind: input, shape index: {}]   ;;  %s1778_s4 = inlined_call_operand.vmem [shape: f32[1,64], index: 4, kind: input, shape index: {}]   ;;  %s1779_s5 = inlined_call_operand.vmem [shape: bf16[64,13], index: 5, kind: input, shape index: {}]   ;;  %s1780_s6 = inlined_call_operand.vmem [shape: f32[1,13], index: 6, kind: input, shape index: {}]   ;;  %s1781_s7 = inlined_call_operand.vmem [shape: bf16[256,32], index: 7, kind: output, shape index: {0}]   ;;  %s1782_s8 = inlined_call_operand.vmem [shape: bf16[256,64], index: 8, kind: output, shape index: {1}]   ;;  %s1783_s9 = inlined_call_operand.vmem [shape: bf16[256,13], index: 9, kind: output, shape index: {2}]  }
   0x1 LB: > { %s1227_s10 = sadd.s32 4294967295, %s1488_s30   ;;  %p1231_p0 = scmp.ge.s32.totalorder %s1488_s30, 1  ;;  %s1488_s30 = sphi %s1540_s30, %s20_s30  }
   0x2   : > { %p293_p1 = scmp.lt.s32.totalorder %s1488_s30, 3 }
   0x4   : > { %p294_p2 = pnand %p1231_p0, %p293_p1 }
   0x5   : > { %v388_v0 = vld [vmem:[%s1775_s1] sm:$0x7] (!%p294_p2)  ;;  %vm421_vm0 = vcmask (!%p294_p2), 1042432   ;;  %s1232_s13 = sshll.u32 (!%p294_p2), %s1227_s10, 4  ;;  %vm396_vm1 = vcmask (!%p294_p2), 48128   ;;  %v1477_v27 = vld [vmem:[%s1777_s3 + $0x8] sm:$0xff] (!%p294_p2)  }
   0x6   : > { %297 = sbr.rel (%p294_p2) target bundleno = 708 (0x2c4), region = 48  ;;  %v1476_v1 = vld [vmem:[%s1777_s3] sm:$0xff] (!%p294_p2)   ;;  %1466 = vmatprep.subr.msk.bf16.mxu0 (!%p294_p2), %vm421_vm0, %v388_v0  ;;  %v423_v2 = vsel (!%p294_p2), %vm421_vm0, %v388_v0, 0  ;;  %p340_p3 = scmp.lt.s32.totalorder (!%p294_p2), %s1232_s13, 31  ;;  %1467 = vmatprep.subr.msk.bf16.mxu1 (!%p294_p2), %vm421_vm0, %v388_v0  ;;  %v1479_v29 = vld [vmem:[%s1779_s5 + $0x8] sm:$0xff] (!%p294_p2)   ;;  %vm602_vm2 = vcmask (!%p294_p2), 257024  }
   0x7   : > { %1403 = vmatpush3.bf16.msra.mxu0 (!%p294_p2), %v423_v2  ;;  %1465 = vmatpush3.bf16.msra.mxu1 (!%p294_p2), %v423_v2  ;;  %v1478_v28 = vld [vmem:[%s1779_s5] sm:$0xff] (!%p294_p2)   ;;  %vm642_vm3 = vcmask (!%p294_p2), 261120   ;;  %vm844_vm4 = vcmask (!%p294_p2), 519168   ;;  %vm900_vm5 = vcmask (!%p294_p2), 523264   ;;  %vm1086_vm6 = vcmask (!%p294_p2), 101376  }
   0x8   : > { %1420 = vmatprep.subr.bf16.mxu1 (!%p294_p2), %v1476_v1  ;;  %1440 = vmatprep.subr.bf16.mxu0 (!%p294_p2), %v1478_v28  ;;  %v1580_v30 = vld [vmem:[%s1776_s2] ss:$0 sm:$0xff] (!%p294_p2) }
   0xd   : > { %s1785_s13 = smov (!%p340_p3, %s1232_s13), 31 }
   0xe   : > { %s1233_s16 = sshll.u32 %s1785_s13, 3  ;;  %s1583_s28 = sshll.u32 %s1785_s13, 2 }
   0xf   : > { %s343_s19 = scalar_lea.vmem %s1774_s0, %s1233_s16  ;;  %s1592_s11 = scalar_lea.vmem %s1781_s7, %s1583_s28 }
  0x10   : > { %v364_v3 = vld [vmem:[%s343_s19] sm:$0xff]  ;;  %v365_v4 = vld [vmem:[%s343_s19 + $0x8] sm:$0xff]  ;;  %v366_v5 = vld [vmem:[%s343_s19 + $0x10] sm:$0xff]  ;;  %s1675_s20 = scalar_lea.vmem %s1782_s8, %s1583_s28  ;;  %s1737_s25 = scalar_lea.vmem %s1783_s9, %s1583_s28 }
  0x11   : > { %v380_v6 = vpack.c.bf16 %v365_v4, %v364_v3  ;;  %v367_v7 = vld [vmem:[%s343_s19 + $0x18] sm:$0xff]  ;;  %v368_v8 = vld [vmem:[%s343_s19 + $0x20] sm:$0xff]  ;;  %v369_v9 = vld [vmem:[%s343_s19 + $0x28] sm:$0xff] }
  0x12   : > { %v381_v10 = vpack.c.bf16 %v367_v7, %v366_v5  ;;  %v382_v11 = vpack.c.bf16 %v369_v9, %v368_v8  ;;  %v372_v12 = vld [vmem:[%s343_s19 + $0x40] sm:$0xff]  ;;  %v373_v13 = vld [vmem:[%s343_s19 + $0x48] sm:$0xff]  ;;  %v374_v14 = vld [vmem:[%s343_s19 + $0x50] sm:$0xff] }
  0x13   : > { %1404 = vmatprep.mubr.msk.bf16.mxu0 %vm396_vm1, %v380_v6  ;;  %v375_v15 = vld [vmem:[%s343_s19 + $0x58] sm:$0xff]  ;;  %v384_v16 = vpack.c.bf16 %v373_v13, %v372_v12  ;;  %v376_v18 = vld [vmem:[%s343_s19 + $0x60] sm:$0xff]  ;;  %v377_v19 = vld [vmem:[%s343_s19 + $0x68] sm:$0xff] }
  0x14   : > { %1405 = vmatmul.mubr.msk.bf16.vlgmr.msra.gmra.mrb[0].mxu0 %vm396_vm1, %v381_v10  ;;  %v385_v17 = vpack.c.bf16 %v375_v15, %v374_v14  ;;  %v370_v20 = vld [vmem:[%s343_s19 + $0x30] sm:$0xff]  ;;  %v371_v21 = vld [vmem:[%s343_s19 + $0x38] sm:$0xff]  ;;  %v386_v22 = vpack.c.bf16 %v377_v19, %v376_v18 }
  0x15   : > { %1408 = vmatprep.mubr.msk.bf16.mxu0 %vm396_vm1, %v382_v11  ;;  %1412 = vmatprep.mubr.msk.bf16.mxu1 %vm396_vm1, %v384_v16  ;;  %v383_v23 = vpack.c.bf16 %v371_v21, %v370_v20  ;;  %v378_v24 = vld [vmem:[%s343_s19 + $0x70] sm:$0xff]  ;;  %v379_v25 = vld [vmem:[%s343_s19 + $0x78] sm:$0xff] }
  0x16   : > { %1413 = vmatmul.mubr.msk.bf16.vlgmr.msra.gmra.mrb[0].mxu1 %vm396_vm1, %v385_v17  ;;  %v387_v26 = vpack.c.bf16 %v379_v25, %v378_v24  ;;  %1441 = vmatpush3.bf16.msra.mxu0 %v1478_v28 }
  0x17   : > { %1416 = vmatprep.mubr.msk.bf16.mxu1 %vm396_vm1, %v386_v22  ;;  %1421 = vmatpush3.bf16.msra.mxu1 %v1476_v1 }
  0x18   : > { %1422 = vmatprep.subr.bf16.mxu1 %v1477_v27  ;;  %1442 = vmatprep.subr.bf16.mxu0 %v1479_v29 }
  0x1a   : > { %1443 = vmatpush3.bf16.msra.mxu0 %v1479_v29 }
  0x1b   : > { %1423 = vmatpush3.bf16.msra.mxu1 %v1477_v27 }
  0x1c   : > { %1409 = vmatmul.mubr.msk.bf16.gmra.mrb[4].mxu0 %vm396_vm1, %v383_v23 }
  0x1e   : > { %1417 = vmatmul.mubr.msk.bf16.gmra.mrb[4].mxu1 %vm396_vm1, %v387_v26 }
  0xe7   : > { %v1406_v31 = vpop.f32.mrb[0].mxu0 }
  0xe8   : > { %v468_v32 = vadd.f32 %v1406_v31, %v1580_v30  ;;  %v459_v33 = vpop.f32.mrb[1].mxu0 }
  0xe9   : > { %v460_v34 = vadd.f32 %v1580_v30, %v459_v33  ;;  %v1407_v35 = vpop.f32.mrb[2].mxu0  ;;  %v1414_v39 = vpop.f32.mrb[0].mxu1 }
  0xea   : > { %v524_v36 = vmax.f32 %v468_v32, 0.0  ;;  %v471_v37 = vadd.f32 %v1407_v35, %v1580_v30  ;;  %v462_v38 = vpop.f32.mrb[3].mxu0  ;;  %v500_v42 = vadd.f32 %v1414_v39, %v1580_v30  ;;  %v491_v43 = vpop.f32.mrb[1].mxu1  ;;  %v1480_v39 = vld [vmem:[%s1779_s5 + $0x10] sm:$0xff]  }
  0xeb   : > { %v522_v40 = vmax.f32 %v460_v34, 0.0  ;;  %v463_v41 = vadd.f32 %v1580_v30, %v462_v38  ;;  %v492_v46 = vadd.f32 %v1580_v30, %v491_v43  ;;  %v1415_v47 = vpop.f32.mrb[2].mxu1  ;;  %1444 = vmatprep.subr.bf16.mxu0 %v1480_v39 }
  0xec   : > { %v1325_v44 = vpack.c.bf16 %v524_v36, %v524_v36  ;;  %v525_v45 = vmax.f32 %v471_v37, 0.0  ;;  %v1597_v50 = vmax.f32 %v500_v42, 0.0  ;;  %v503_v51 = vadd.f32 %v1415_v47, %v1580_v30  ;;  %v494_v52 = vpop.f32.mrb[3].mxu1  ;;  %1445 = vmatpush3.bf16.msra.mxu0 %v1480_v39 }
  0xed   : > { %v1323_v48 = vpack.c.bf16 %v522_v40, %v522_v40  ;;  %v523_v49 = vmax.f32 %v463_v41, 0.0  ;;  %v1602_v55 = vmax.f32 %v492_v46, 0.0  ;;  %v495_v56 = vadd.f32 %v1580_v30, %v494_v52  ;;  %v1666_v41 = vld [vmem:[%s1778_s4] ss:$0 sm:$0xff] }
  0xee   : > { %605 = vst.msk [vmem:[%s1592_s11 + $0x8] sm:$0xf] %vm602_vm2, %v1325_v44  ;;  %v539_v53 = vpack.c.bf16 %v525_v45, %v524_v36  ;;  %v1326_v54 = vpack.c.bf16 %v525_v45, %v525_v45  ;;  %v1333_v60 = vpack.c.bf16 %v1597_v50, %v1597_v50  ;;  %v533_v61 = vmax.f32 %v503_v51, 0.0 }
  0xef   : > { %603 = vst.msk [vmem:[%s1592_s11] sm:$0xf] %vm602_vm2, %v1323_v48  ;;  %v538_v57 = vpack.c.bf16 %v523_v49, %v522_v40  ;;  %v1324_v58 = vpack.c.bf16 %v523_v49, %v523_v49  ;;  %v1410_v59 = vpop.f32.mrb[4].mxu0  ;;  %v1331_v0 = vpack.c.bf16 %v1602_v55, %v1602_v55  ;;  %v531_v1 = vmax.f32 %v495_v56, 0.0  ;;  %v1481_v40 = vld [vmem:[%s1779_s5 + $0x18] sm:$0xff]  }
  0xf0   : > { %606 = vst.msk [vmem:[%s1592_s11 + $0xc] sm:$0xf] %vm602_vm2, %v1326_v54  ;;  %v484_v62 = vadd.f32 %v1410_v59, %v1580_v30  ;;  %v475_v63 = vpop.f32.mrb[5].mxu0  ;;  %613 = vst.msk [vmem:[%s1592_s11 + $0x28] sm:$0xf] %vm602_vm2, %v1333_v60  ;;  %v543_v4 = vpack.c.bf16 %v533_v61, %v1597_v50  ;;  %v1334_v5 = vpack.c.bf16 %v533_v61, %v533_v61  ;;  %1446 = vmatprep.subr.bf16.mxu0 %v1481_v40 }
  0xf1   : > { %604 = vst.msk [vmem:[%s1592_s11 + $0x4] sm:$0xf] %vm602_vm2, %v1324_v58  ;;  %v476_v2 = vadd.f32 %v1580_v30, %v475_v63  ;;  %v1411_v3 = vpop.f32.mrb[6].mxu0  ;;  %1424 = vmatprep.mubr.msk.bf16.mxu1 %vm642_vm3, %v538_v57  ;;  %611 = vst.msk [vmem:[%s1592_s11 + $0x20] sm:$0xf] %vm602_vm2, %v1331_v0  ;;  %v542_v9 = vpack.c.bf16 %v531_v1, %v1602_v55  ;;  %v1332_v10 = vpack.c.bf16 %v531_v1, %v531_v1  ;;  %v1418_v11 = vpop.f32.mrb[4].mxu1 }
  0xf2   : > { %v528_v6 = vmax.f32 %v484_v62, 0.0  ;;  %v487_v7 = vadd.f32 %v1411_v3, %v1580_v30  ;;  %v478_v8 = vpop.f32.mrb[7].mxu0  ;;  %1425 = vmatmul.mubr.msk.bf16.vlgmr.msra.gmra.mrb[8].mxu1 %vm642_vm3, %v539_v53  ;;  %614 = vst.msk [vmem:[%s1592_s11 + $0x2c] sm:$0xf] %vm602_vm2, %v1334_v5  ;;  %v516_v14 = vadd.f32 %v1418_v11, %v1580_v30  ;;  %v507_v15 = vpop.f32.mrb[5].mxu1  ;;  %1447 = vmatpush3.bf16.msra.mxu0 %v1481_v40 }
  0xf3   : > { %v526_v12 = vmax.f32 %v476_v2, 0.0  ;;  %v479_v13 = vadd.f32 %v1580_v30, %v478_v8  ;;  %612 = vst.msk [vmem:[%s1592_s11 + $0x24] sm:$0xf] %vm602_vm2, %v1332_v10  ;;  %v508_v18 = vadd.f32 %v1580_v30, %v507_v15  ;;  %v1419_v19 = vpop.f32.mrb[6].mxu1 }
  0xf4   : > { %v1329_v16 = vpack.c.bf16 %v528_v6, %v528_v6  ;;  %v529_v17 = vmax.f32 %v487_v7, 0.0  ;;  %v536_v22 = vmax.f32 %v516_v14, 0.0  ;;  %v519_v23 = vadd.f32 %v1419_v19, %v1580_v30  ;;  %v510_v24 = vpop.f32.mrb[7].mxu1 }
  0xf5   : > { %v1327_v20 = vpack.c.bf16 %v526_v12, %v526_v12  ;;  %v527_v21 = vmax.f32 %v479_v13, 0.0  ;;  %v534_v27 = vmax.f32 %v508_v18, 0.0  ;;  %v511_v28 = vadd.f32 %v1580_v30, %v510_v24 }
  0xf6   : > { %609 = vst.msk [vmem:[%s1592_s11 + $0x18] sm:$0xf] %vm602_vm2, %v1329_v16  ;;  %v541_v25 = vpack.c.bf16 %v529_v17, %v528_v6  ;;  %v1330_v26 = vpack.c.bf16 %v529_v17, %v529_v17  ;;  %v1337_v32 = vpack.c.bf16 %v536_v22, %v536_v22  ;;  %v537_v33 = vmax.f32 %v519_v23, 0.0 }
  0xf7   : > { %607 = vst.msk [vmem:[%s1592_s11 + $0x10] sm:$0xf] %vm602_vm2, %v1327_v20  ;;  %v540_v29 = vpack.c.bf16 %v527_v21, %v526_v12  ;;  %v1328_v31 = vpack.c.bf16 %v527_v21, %v527_v21  ;;  %v1335_v34 = vpack.c.bf16 %v534_v27, %v534_v27  ;;  %v535_v35 = vmax.f32 %v511_v28, 0.0 }
  0xf8   : > { %610 = vst.msk [vmem:[%s1592_s11 + $0x1c] sm:$0xf] %vm602_vm2, %v1330_v26  ;;  %617 = vst.msk [vmem:[%s1592_s11 + $0x38] sm:$0xf] %vm602_vm2, %v1337_v32  ;;  %v545_v36 = vpack.c.bf16 %v537_v33, %v536_v22  ;;  %v1338_v30 = vpack.c.bf16 %v537_v33, %v537_v33 }
  0xf9   : > { %608 = vst.msk [vmem:[%s1592_s11 + $0x14] sm:$0xf] %vm602_vm2, %v1328_v31  ;;  %1428 = vmatprep.mubr.msk.bf16.mxu1 %vm642_vm3, %v540_v29  ;;  %615 = vst.msk [vmem:[%s1592_s11 + $0x30] sm:$0xf] %vm602_vm2, %v1335_v34  ;;  %v544_v37 = vpack.c.bf16 %v535_v35, %v534_v27  ;;  %v1336_v38 = vpack.c.bf16 %v535_v35, %v535_v35 }
  0xfa   : > { %1429 = vmatmul.mubr.msk.bf16.gmra.mrb[12].mxu1 %vm642_vm3, %v541_v25  ;;  %618 = vst.msk [vmem:[%s1592_s11 + $0x3c] sm:$0xf] %vm602_vm2, %v1338_v30 }
  0xfb   : > { %1432 = vmatprep.mubr.msk.bf16.mxu1 %vm642_vm3, %v542_v9  ;;  %616 = vst.msk [vmem:[%s1592_s11 + $0x34] sm:$0xf] %vm602_vm2, %v1336_v38 }
 0x102   : > { %1433 = vmatmul.mubr.msk.bf16.gmra.mrb[16].mxu1 %vm642_vm3, %v543_v4 }
 0x103   : > { %1436 = vmatprep.mubr.msk.bf16.mxu1 %vm642_vm3, %v544_v37 }
 0x10a   : > { %1437 = vmatmul.mubr.msk.bf16.gmra.mrb[20].mxu1 %vm642_vm3, %v545_v36 }
 0x1c5   : > { %v1426_v42 = vpop.f32.mrb[8].mxu1 }
 0x1c6   : > { %v710_v43 = vadd.f32 %v1426_v42, %v1666_v41  ;;  %v701_v44 = vpop.f32.mrb[9].mxu1 }
 0x1c7   : > { %v702_v45 = vadd.f32 %v1666_v41, %v701_v44  ;;  %v1427_v46 = vpop.f32.mrb[10].mxu1 }
 0x1c8   : > { %v766_v47 = vmax.f32 %v710_v43, 0.0  ;;  %v713_v48 = vadd.f32 %v1427_v46, %v1666_v41  ;;  %v704_v49 = vpop.f32.mrb[11].mxu1 }
 0x1c9   : > { %v764_v50 = vmax.f32 %v702_v45, 0.0  ;;  %v705_v51 = vadd.f32 %v1666_v41, %v704_v49 }
 0x1ca   : > { %v1341_v52 = vpack.c.bf16 %v766_v47, %v766_v47  ;;  %v767_v53 = vmax.f32 %v713_v48, 0.0 }
 0x1cb   : > { %v1339_v54 = vpack.c.bf16 %v764_v50, %v764_v50  ;;  %v765_v55 = vmax.f32 %v705_v51, 0.0 }
 0x1cc   : > { %847 = vst.msk [vmem:[%s1675_s20 + $0x8] sm:$0xf] %vm844_vm4, %v1341_v52  ;;  %v781_v56 = vpack.c.bf16 %v767_v53, %v766_v47  ;;  %v1342_v57 = vpack.c.bf16 %v767_v53, %v767_v53 }
 0x1cd   : > { %845 = vst.msk [vmem:[%s1675_s20] sm:$0xf] %vm844_vm4, %v1339_v54  ;;  %v780_v58 = vpack.c.bf16 %v765_v55, %v764_v50  ;;  %v1340_v59 = vpack.c.bf16 %v765_v55, %v765_v55  ;;  %v1430_v60 = vpop.f32.mrb[12].mxu1 }
 0x1ce   : > { %848 = vst.msk [vmem:[%s1675_s20 + $0xc] sm:$0xf] %vm844_vm4, %v1342_v57  ;;  %v726_v61 = vadd.f32 %v1430_v60, %v1666_v41  ;;  %v717_v62 = vpop.f32.mrb[13].mxu1 }
 0x1cf   : > { %846 = vst.msk [vmem:[%s1675_s20 + $0x4] sm:$0xf] %vm844_vm4, %v1340_v59  ;;  %v718_v63 = vadd.f32 %v1666_v41, %v717_v62  ;;  %v1431_v0 = vpop.f32.mrb[14].mxu1  ;;  %1448 = vmatprep.mubr.msk.bf16.mxu0 %vm900_vm5, %v780_v58 }
 0x1d0   : > { %v770_v1 = vmax.f32 %v726_v61, 0.0  ;;  %v729_v2 = vadd.f32 %v1431_v0, %v1666_v41  ;;  %v720_v3 = vpop.f32.mrb[15].mxu1  ;;  %1449 = vmatmul.mubr.msk.bf16.vlgmr.msra.gmra.mrb[8].mxu0 %vm900_vm5, %v781_v56 }
 0x1d1   : > { %v768_v4 = vmax.f32 %v718_v63, 0.0  ;;  %v721_v5 = vadd.f32 %v1666_v41, %v720_v3 }
 0x1d2   : > { %v1345_v6 = vpack.c.bf16 %v770_v1, %v770_v1  ;;  %v771_v7 = vmax.f32 %v729_v2, 0.0 }
 0x1d3   : > { %v1343_v8 = vpack.c.bf16 %v768_v4, %v768_v4  ;;  %v769_v9 = vmax.f32 %v721_v5, 0.0 }
 0x1d4   : > { %851 = vst.msk [vmem:[%s1675_s20 + $0x18] sm:$0xf] %vm844_vm4, %v1345_v6  ;;  %v783_v10 = vpack.c.bf16 %v771_v7, %v770_v1  ;;  %v1346_v11 = vpack.c.bf16 %v771_v7, %v771_v7 }
 0x1d5   : > { %849 = vst.msk [vmem:[%s1675_s20 + $0x10] sm:$0xf] %vm844_vm4, %v1343_v8  ;;  %v782_v12 = vpack.c.bf16 %v769_v9, %v768_v4  ;;  %v1344_v13 = vpack.c.bf16 %v769_v9, %v769_v9  ;;  %v1434_v14 = vpop.f32.mrb[16].mxu1 }
 0x1d6   : > { %852 = vst.msk [vmem:[%s1675_s20 + $0x1c] sm:$0xf] %vm844_vm4, %v1346_v11  ;;  %v742_v15 = vadd.f32 %v1434_v14, %v1666_v41  ;;  %v733_v16 = vpop.f32.mrb[17].mxu1 }
 0x1d7   : > { %850 = vst.msk [vmem:[%s1675_s20 + $0x14] sm:$0xf] %vm844_vm4, %v1344_v13  ;;  %v734_v17 = vadd.f32 %v1666_v41, %v733_v16  ;;  %v1435_v18 = vpop.f32.mrb[18].mxu1  ;;  %1452 = vmatprep.mubr.msk.bf16.mxu0 %vm900_vm5, %v782_v12 }
 0x1d8   : > { %v774_v19 = vmax.f32 %v742_v15, 0.0  ;;  %v745_v20 = vadd.f32 %v1435_v18, %v1666_v41  ;;  %v736_v21 = vpop.f32.mrb[19].mxu1  ;;  %1453 = vmatmul.mubr.msk.bf16.gmra.mrb[12].mxu0 %vm900_vm5, %v783_v10 }
 0x1d9   : > { %v772_v22 = vmax.f32 %v734_v17, 0.0  ;;  %v737_v23 = vadd.f32 %v1666_v41, %v736_v21 }
 0x1da   : > { %v1349_v24 = vpack.c.bf16 %v774_v19, %v774_v19  ;;  %v775_v25 = vmax.f32 %v745_v20, 0.0 }
 0x1db   : > { %v1347_v26 = vpack.c.bf16 %v772_v22, %v772_v22  ;;  %v773_v27 = vmax.f32 %v737_v23, 0.0 }
 0x1dc   : > { %855 = vst.msk [vmem:[%s1675_s20 + $0x28] sm:$0xf] %vm844_vm4, %v1349_v24  ;;  %v785_v28 = vpack.c.bf16 %v775_v25, %v774_v19  ;;  %v1350_v29 = vpack.c.bf16 %v775_v25, %v775_v25 }
 0x1dd   : > { %853 = vst.msk [vmem:[%s1675_s20 + $0x20] sm:$0xf] %vm844_vm4, %v1347_v26  ;;  %v784_v31 = vpack.c.bf16 %v773_v27, %v772_v22  ;;  %v1348_v32 = vpack.c.bf16 %v773_v27, %v773_v27  ;;  %v1438_v33 = vpop.f32.mrb[20].mxu1 }
 0x1de   : > { %856 = vst.msk [vmem:[%s1675_s20 + $0x2c] sm:$0xf] %vm844_vm4, %v1350_v29  ;;  %v758_v34 = vadd.f32 %v1438_v33, %v1666_v41  ;;  %v749_v35 = vpop.f32.mrb[21].mxu1 }
 0x1df   : > { %854 = vst.msk [vmem:[%s1675_s20 + $0x24] sm:$0xf] %vm844_vm4, %v1348_v32  ;;  %v750_v36 = vadd.f32 %v1666_v41, %v749_v35  ;;  %v1439_v30 = vpop.f32.mrb[22].mxu1  ;;  %1456 = vmatprep.mubr.msk.bf16.mxu0 %vm900_vm5, %v784_v31 }
 0x1e0   : > { %v778_v37 = vmax.f32 %v758_v34, 0.0  ;;  %v761_v38 = vadd.f32 %v1439_v30, %v1666_v41  ;;  %v752_v39 = vpop.f32.mrb[23].mxu1  ;;  %1457 = vmatmul.mubr.msk.bf16.gmra.mrb[16].mxu0 %vm900_vm5, %v785_v28 }
 0x1e1   : > { %v776_v40 = vmax.f32 %v750_v36, 0.0  ;;  %v753_v42 = vadd.f32 %v1666_v41, %v752_v39  ;;  %v1292_v41 = vld [vmem:[%s1780_s6] ss:$0 sm:$0xff] }
 0x1e2   : > { %v1353_v43 = vpack.c.bf16 %v778_v37, %v778_v37  ;;  %v779_v44 = vmax.f32 %v761_v38, 0.0 }
 0x1e3   : > { %v1351_v45 = vpack.c.bf16 %v776_v40, %v776_v40  ;;  %v777_v46 = vmax.f32 %v753_v42, 0.0 }
 0x1e4   : > { %859 = vst.msk [vmem:[%s1675_s20 + $0x38] sm:$0xf] %vm844_vm4, %v1353_v43  ;;  %v787_v47 = vpack.c.bf16 %v779_v44, %v778_v37  ;;  %v1354_v48 = vpack.c.bf16 %v779_v44, %v779_v44 }
 0x1e5   : > { %857 = vst.msk [vmem:[%s1675_s20 + $0x30] sm:$0xf] %vm844_vm4, %v1351_v45  ;;  %v786_v49 = vpack.c.bf16 %v777_v46, %v776_v40  ;;  %v1352_v50 = vpack.c.bf16 %v777_v46, %v777_v46 }
 0x1e6   : > { %860 = vst.msk [vmem:[%s1675_s20 + $0x3c] sm:$0xf] %vm844_vm4, %v1354_v48 }
 0x1e7   : > { %858 = vst.msk [vmem:[%s1675_s20 + $0x34] sm:$0xf] %vm844_vm4, %v1352_v50  ;;  %1460 = vmatprep.mubr.msk.bf16.mxu0 %vm900_vm5, %v786_v49 }
 0x1e8   : > { %1461 = vmatmul.mubr.msk.bf16.gmra.mrb[20].mxu0 %vm900_vm5, %v787_v47 }
 0x2a3   : > { %v1450_v51 = vpop.f32.mrb[8].mxu0 }
 0x2a4   : > { %v968_v52 = vadd.f32 %v1450_v51, %v1292_v41  ;;  %v959_v53 = vpop.f32.mrb[9].mxu0 }
 0x2a5   : > { %v960_v54 = vadd.f32 %v1292_v41, %v959_v53  ;;  %v1451_v55 = vpop.f32.mrb[10].mxu0 }
 0x2a6   : > { %v1357_v56 = vpack.c.bf16 %v968_v52, %v968_v52  ;;  %v971_v57 = vadd.f32 %v1451_v55, %v1292_v41  ;;  %v962_v58 = vpop.f32.mrb[11].mxu0 }
 0x2a7   : > { %v1355_v59 = vpack.c.bf16 %v960_v54, %v960_v54  ;;  %v963_v60 = vadd.f32 %v1292_v41, %v962_v58 }
 0x2a8   : > { %1089 = vst.msk [vmem:[%s1737_s25 + $0x8] sm:$0xf] %vm1086_vm6, %v1357_v56  ;;  %v1358_v61 = vpack.c.bf16 %v971_v57, %v971_v57 }
 0x2a9   : > { %1087 = vst.msk [vmem:[%s1737_s25] sm:$0xf] %vm1086_vm6, %v1355_v59  ;;  %v1356_v62 = vpack.c.bf16 %v963_v60, %v963_v60 }
 0x2aa   : > { %1090 = vst.msk [vmem:[%s1737_s25 + $0xc] sm:$0xf] %vm1086_vm6, %v1358_v61 }
 0x2ab   : > { %1088 = vst.msk [vmem:[%s1737_s25 + $0x4] sm:$0xf] %vm1086_vm6, %v1356_v62  ;;  %v1454_v63 = vpop.f32.mrb[12].mxu0 }
 0x2ac   : > { %v984_v0 = vadd.f32 %v1454_v63, %v1292_v41  ;;  %v975_v1 = vpop.f32.mrb[13].mxu0 }
 0x2ad   : > { %v976_v2 = vadd.f32 %v1292_v41, %v975_v1  ;;  %v1455_v3 = vpop.f32.mrb[14].mxu0 }
 0x2ae   : > { %v1361_v4 = vpack.c.bf16 %v984_v0, %v984_v0  ;;  %v987_v5 = vadd.f32 %v1455_v3, %v1292_v41  ;;  %v978_v6 = vpop.f32.mrb[15].mxu0 }
 0x2af   : > { %v1359_v7 = vpack.c.bf16 %v976_v2, %v976_v2  ;;  %v979_v8 = vadd.f32 %v1292_v41, %v978_v6 }
 0x2b0   : > { %1093 = vst.msk [vmem:[%s1737_s25 + $0x18] sm:$0xf] %vm1086_vm6, %v1361_v4  ;;  %v1362_v9 = vpack.c.bf16 %v987_v5, %v987_v5 }
 0x2b1   : > { %1091 = vst.msk [vmem:[%s1737_s25 + $0x10] sm:$0xf] %vm1086_vm6, %v1359_v7  ;;  %v1360_v10 = vpack.c.bf16 %v979_v8, %v979_v8 }
 0x2b2   : > { %1094 = vst.msk [vmem:[%s1737_s25 + $0x1c] sm:$0xf] %vm1086_vm6, %v1362_v9 }
 0x2b3   : > { %1092 = vst.msk [vmem:[%s1737_s25 + $0x14] sm:$0xf] %vm1086_vm6, %v1360_v10  ;;  %v1458_v11 = vpop.f32.mrb[16].mxu0 }
 0x2b4   : > { %v1000_v12 = vadd.f32 %v1458_v11, %v1292_v41  ;;  %v991_v13 = vpop.f32.mrb[17].mxu0 }
 0x2b5   : > { %v992_v14 = vadd.f32 %v1292_v41, %v991_v13  ;;  %v1459_v15 = vpop.f32.mrb[18].mxu0 }
 0x2b6   : > { %v1365_v16 = vpack.c.bf16 %v1000_v12, %v1000_v12  ;;  %v1003_v17 = vadd.f32 %v1459_v15, %v1292_v41  ;;  %v994_v18 = vpop.f32.mrb[19].mxu0 }
 0x2b7   : > { %v1363_v19 = vpack.c.bf16 %v992_v14, %v992_v14  ;;  %v995_v20 = vadd.f32 %v1292_v41, %v994_v18 }
 0x2b8   : > { %1097 = vst.msk [vmem:[%s1737_s25 + $0x28] sm:$0xf] %vm1086_vm6, %v1365_v16  ;;  %v1366_v21 = vpack.c.bf16 %v1003_v17, %v1003_v17 }
 0x2b9   : > { %1095 = vst.msk [vmem:[%s1737_s25 + $0x20] sm:$0xf] %vm1086_vm6, %v1363_v19  ;;  %v1364_v22 = vpack.c.bf16 %v995_v20, %v995_v20 }
 0x2ba   : > { %1098 = vst.msk [vmem:[%s1737_s25 + $0x2c] sm:$0xf] %vm1086_vm6, %v1366_v21 }
 0x2bb   : > { %1096 = vst.msk [vmem:[%s1737_s25 + $0x24] sm:$0xf] %vm1086_vm6, %v1364_v22  ;;  %v1462_v23 = vpop.f32.mrb[20].mxu0 }
 0x2bc   : > { %v1016_v24 = vadd.f32 %v1462_v23, %v1292_v41  ;;  %v1007_v25 = vpop.f32.mrb[21].mxu0 }
 0x2bd   : > { %v1008_v26 = vadd.f32 %v1292_v41, %v1007_v25  ;;  %v1463_v27 = vpop.f32.mrb[22].mxu0 }
 0x2be   : > { %v1369_v28 = vpack.c.bf16 %v1016_v24, %v1016_v24  ;;  %v1019_v29 = vadd.f32 %v1463_v27, %v1292_v41  ;;  %v1010_v31 = vpop.f32.mrb[23].mxu0 }
 0x2bf   : > { %v1367_v32 = vpack.c.bf16 %v1008_v26, %v1008_v26  ;;  %v1011_v33 = vadd.f32 %v1292_v41, %v1010_v31 }
 0x2c0   : > { %1101 = vst.msk [vmem:[%s1737_s25 + $0x38] sm:$0xf] %vm1086_vm6, %v1369_v28  ;;  %v1370_v34 = vpack.c.bf16 %v1019_v29, %v1019_v29 }
 0x2c1   : > { %1099 = vst.msk [vmem:[%s1737_s25 + $0x30] sm:$0xf] %vm1086_vm6, %v1367_v32  ;;  %v1368_v35 = vpack.c.bf16 %v1011_v33, %v1011_v33 }
 0x2c2   : > { %1102 = vst.msk [vmem:[%s1737_s25 + $0x3c] sm:$0xf] %vm1086_vm6, %v1370_v34 }
 0x2c3   : > { %1100 = vst.msk [vmem:[%s1737_s25 + $0x34] sm:$0xf] %vm1086_vm6, %v1368_v35 }
 0x2c4 PF: > { %s20_s30 = sadd.s32 1, %s1488_s30  }
 0x2c5   : > { %p17_p4 = scmp.ge.s32.totalorder %s20_s30, 4  }
 0x2c7   :  { %19 = sbr.rel (!%p17_p4) target bundleno = 1 (0x1), region = 102 }

</bundles_post_ra>
